<compile_context>
chip_gen: v6e
topology: v6e:2x2x1
jax: 0.10.0
libtpu: 0.0.40
codegen_flags: <defaults>
</compile_context>

<pallas_src>
import functools

import jax
import jax.numpy as jnp
from jax import lax
from jax.experimental import pallas as pl
from jax.experimental.pallas import tpu as pltpu

EPS = 1e-5


# ----------------------------- kernel helpers ------------------------------ #
def _conv1x1_vpu(x, w, b):
    """1x1 conv as unrolled VPU broadcast-FMAs (channel counts too small for MXU).

    x: (C_in, S) f32, w: (C_out, C_in) f32, b: (C_out, 1) f32 -> (C_out, S) f32.
    """
    c_out, c_in = w.shape
    acc = w[:, 0:1] * x[0:1, :]
    for i in range(1, c_in):
        acc = acc + w[:, i:i + 1] * x[i:i + 1, :]
    return acc + b


def _instance_norm(y, inv_s):
    """Centered per-(sample,channel) spatial normalization (biased variance).

    Returns z and per-channel E[z^2] = var / (var + EPS).  The per-channel mean
    of z is analytically zero, so it is not materialized (no extra full-tile
    passes for the BatchNorm statistics).
    """
    mu = jnp.sum(y, axis=-1, keepdims=True) * inv_s          # (C, 1)
    d = y - mu
    var = jnp.sum(d * d, axis=-1, keepdims=True) * inv_s     # centered, >= 0
    z = d * lax.rsqrt(var + EPS)
    ez2 = var / (var + EPS)                                  # tiny (C, 1) divide
    return z, ez2


# -------------------------------- kernel ------------------------------------ #
def _make_fused_kernel(pre, n, inv_s, inv_n):
    """Fused conv1->IN1->BN1->ReLU->conv2->IN2->BN2 (+residual) ->ReLU kernel."""

    def kernel(*refs):
        if pre:
            (x_ref, w1_ref, b1_ref, g1_ref, bt1_ref,
             w2_ref, b2_ref, g2_ref, bt2_ref, wr_ref, br_ref, o_ref) = refs
        else:
            (x_ref, w1_ref, b1_ref, g1_ref, bt1_ref,
             w2_ref, b2_ref, g2_ref, bt2_ref, o_ref) = refs

        w1 = w1_ref[...]
        b1 = b1_ref[...]
        w2 = w2_ref[...]
        b2 = b2_ref[...]

        # ---- stage 1: conv1 -> IN1; keep z1 + analytic BN1 stats on-chip ---- #
        z1 = []
        ez1 = None
        for k in range(n):
            xk = x_ref[k].astype(jnp.float32)                # (C_in, S)
            y = _conv1x1_vpu(xk, w1, b1)                     # (C_out, S)
            z, e = _instance_norm(y, inv_s)
            z1.append(z)
            ez1 = e if ez1 is None else ez1 + e

        # Training-mode BatchNorm folded to per-channel scale/shift:
        #   batch mean of z1 ~ 0, batch var = mean_n(var/(var+eps)).
        scale1 = g1_ref[...] * lax.rsqrt(ez1 * inv_n + EPS)  # (C_out, 1)
        shift1 = bt1_ref[...]

        # ---- stage 2: BN1-apply -> ReLU -> conv2 -> IN2 --------------------- #
        z2 = []
        ez2 = None
        for k in range(n):
            h = jnp.maximum(z1[k] * scale1 + shift1, 0.0)
            y = _conv1x1_vpu(h, w2, b2)
            z, e = _instance_norm(y, inv_s)
            z2.append(z)
            ez2 = e if ez2 is None else ez2 + e

        scale2 = g2_ref[...] * lax.rsqrt(ez2 * inv_n + EPS)
        shift2 = bt2_ref[...]

        # ---- stage 3: BN2-apply + residual + ReLU ---------------------------- #
        if pre:
            wr = wr_ref[...]
            br = br_ref[...]
        for k in range(n):
            xk = x_ref[k].astype(jnp.float32)
            r = _conv1x1_vpu(xk, wr, br) if pre else xk
            out = jnp.maximum(z2[k] * scale2 + shift2 + r, 0.0)
            o_ref[k] = out.astype(o_ref.dtype)

    return kernel


# ------------------------------- wrapper ------------------------------------ #
@functools.partial(jax.jit, static_argnames="pre")
def resnet_block_forward(x_nchw, params, pre):
    n, c_in, h, w = x_nchw.shape
    c_out = params["w1"].shape[0]
    s = h * w

    # NCHW -> (N, C, S): pure reshape, no transpose / extra HBM pass.
    x3d = x_nchw.reshape(n, c_in, s)

    # Whole-batch activations stay resident in VMEM for the fused kernel; keep
    # well inside the v7x 32 MiB scoped default (64 MiB physical).
    vmem_bytes = 4 * (n * c_in * s + 3 * n * c_out * s)
    assert vmem_bytes < 24 * 1024 * 1024, "fused ResNet block exceeds VMEM budget"

    vspec = pl.BlockSpec(memory_space=pltpu.MemorySpace.VMEM)
    args = [x3d, params["w1"], params["b1"], params["g1"], params["bt1"],
            params["w2"], params["b2"], params["g2"], params["bt2"]]
    if pre:
        args += [params["wr"], params["br"]]

    out3d = pl.pallas_call(
        _make_fused_kernel(pre, n, 1.0 / s, 1.0 / n),
        out_shape=jax.ShapeDtypeStruct((n, c_out, s), x_nchw.dtype),
        in_specs=[vspec] * len(args),
        out_specs=vspec,
    )(*args)

    return out3d.reshape(n, c_out, h, w)


# ------------------------ deterministic parameter init ---------------------- #
def init_params(key, c_in, c_out, pre):
    ks = jax.random.split(key, 6)

    def conv_w(k, o, i):
        bound = 1.0 / jnp.sqrt(i)
        return jax.random.uniform(k, (o, i), jnp.float32, -bound, bound)

    def conv_b(k, o, i):
        bound = 1.0 / jnp.sqrt(i)
        return jax.random.uniform(k, (o, 1), jnp.float32, -bound, bound)

    p = dict(
        w1=conv_w(ks[0], c_out, c_in), b1=conv_b(ks[1], c_out, c_in),
        g1=jnp.ones((c_out, 1), jnp.float32), bt1=jnp.zeros((c_out, 1), jnp.float32),
        w2=conv_w(ks[2], c_out, c_out), b2=conv_b(ks[3], c_out, c_out),
        g2=jnp.ones((c_out, 1), jnp.float32), bt2=jnp.zeros((c_out, 1), jnp.float32),
    )
    if pre:
        p["wr"] = conv_w(ks[4], c_out, c_in)
        p["br"] = conv_b(ks[5], c_out, c_in)
    return p


# --------------------------- pure-JAX reference ------------------------------ #
def resnet_block_reference(x, params, pre):
    """NCHW reference matching the PyTorch module's training-mode forward."""
    def conv1x1(t, w, b):
        return jnp.einsum("oc,nchw->nohw", w, t,
                          precision=lax.Precision.HIGHEST) + b[None, :, 0, None, None]

    def inorm(t):
        mu = t.mean(axis=(2, 3), keepdims=True)
        var = ((t - mu) ** 2).mean(axis=(2, 3), keepdims=True)
        return (t - mu) / jnp.sqrt(var + EPS)

    def bnorm(t, g, b):
        mu = t.mean(axis=(0, 2, 3), keepdims=True)
        var = ((t - mu) ** 2).mean(axis=(0, 2, 3), keepdims=True)
        return ((t - mu) / jnp.sqrt(var + EPS)) * g[None, :, 0, None, None] \
               + b[None, :, 0, None, None]

    x1 = conv1x1(x, params["wr"], params["br"]) if pre else x
    out = conv1x1(x, params["w1"], params["b1"])
    out = bnorm(inorm(out), params["g1"], params["bt1"])
    out = jnp.maximum(out, 0.0)
    out = conv1x1(out, params["w2"], params["b2"])
    out = bnorm(inorm(out), params["g2"], params["bt2"])
    return jnp.maximum(out + x1, 0.0)


# ---------------------------------- main ------------------------------------- #
if __name__ == "__main__":
    key = jax.random.PRNGKey(0)
    kx, kx2, kp, kp2 = jax.random.split(key, 4)

    # Case 1: pre=True, inchannel != outchannel (projected residual)
    n, c_in, c_out, h, w = 2, 4, 8, 16, 16
    x = jax.random.normal(kx, (n, c_in, h, w), jnp.float32)
    params = init_params(kp, c_in, c_out, pre=True)
    out = resnet_block_forward(x, params, pre=True)
    jax.block_until_ready(out)
    ref = resnet_block_reference(x, params, pre=True)
    assert out.shape == (n, c_out, h, w)
    assert jnp.allclose(out, ref, rtol=1e-3, atol=1e-3), \
        f"pre=True mismatch, max err {jnp.max(jnp.abs(out - ref))}"

    # Case 2: pre=False, inchannel == outchannel (identity skip)
    c_eq = 8
    x2 = jax.random.normal(kx2, (n, c_eq, h, w), jnp.float32)
    params2 = init_params(kp2, c_eq, c_eq, pre=False)
    out2 = resnet_block_forward(x2, params2, pre=False)
    jax.block_until_ready(out2)
    ref2 = resnet_block_reference(x2, params2, pre=False)
    assert out2.shape == (n, c_eq, h, w)
    assert jnp.allclose(out2, ref2, rtol=1e-3, atol=1e-3), \
        f"pre=False mismatch, max err {jnp.max(jnp.abs(out2 - ref2))}"

    print("KERNEL_OK")
</pallas_src>

<mosaic_0001>
module attributes {stable_mosaic.version = 11 : i64} {
  func.func @kernel(%arg0: memref<2x4x256xf32, #tpu.memory_space<vmem>>, %arg1: memref<8x4xf32, #tpu.memory_space<vmem>>, %arg2: memref<8x1xf32, #tpu.memory_space<vmem>>, %arg3: memref<8x1xf32, #tpu.memory_space<vmem>>, %arg4: memref<8x1xf32, #tpu.memory_space<vmem>>, %arg5: memref<8x8xf32, #tpu.memory_space<vmem>>, %arg6: memref<8x1xf32, #tpu.memory_space<vmem>>, %arg7: memref<8x1xf32, #tpu.memory_space<vmem>>, %arg8: memref<8x1xf32, #tpu.memory_space<vmem>>, %arg9: memref<8x4xf32, #tpu.memory_space<vmem>>, %arg10: memref<8x1xf32, #tpu.memory_space<vmem>>, %arg11: memref<2x8x256xf32, #tpu.memory_space<vmem>>) attributes {dimension_semantics = [], scalar_prefetch = 0 : i64, scratch_operands = 0 : i64, tpu.core_type = #tpu.core_type<tc>} {
    %c0 = arith.constant 0 : index
    %c0_0 = arith.constant 0 : index
    %0 = vector.load %arg1[%c0, %c0_0] : memref<8x4xf32, #tpu.memory_space<vmem>>, vector<8x4xf32>
    %c0_1 = arith.constant 0 : index
    %c0_2 = arith.constant 0 : index
    %1 = vector.load %arg2[%c0_1, %c0_2] : memref<8x1xf32, #tpu.memory_space<vmem>>, vector<8x1xf32>
    %c0_3 = arith.constant 0 : index
    %c0_4 = arith.constant 0 : index
    %2 = vector.load %arg5[%c0_3, %c0_4] : memref<8x8xf32, #tpu.memory_space<vmem>>, vector<8x8xf32>
    %c0_5 = arith.constant 0 : index
    %c0_6 = arith.constant 0 : index
    %3 = vector.load %arg6[%c0_5, %c0_6] : memref<8x1xf32, #tpu.memory_space<vmem>>, vector<8x1xf32>
    %c0_7 = arith.constant 0 : index
    %c0_8 = arith.constant 0 : index
    %c0_9 = arith.constant 0 : index
    %4 = vector.load %arg0[%c0_7, %c0_8, %c0_9] : memref<2x4x256xf32, #tpu.memory_space<vmem>>, vector<1x4x256xf32>
    %5 = vector.shape_cast %4 : vector<1x4x256xf32> to vector<4x256xf32>
    %6 = vector.extract_strided_slice %0 {offsets = [0, 0], sizes = [8, 1], strides = [1, 1]} : vector<8x4xf32> to vector<8x1xf32>
    %7 = vector.extract_strided_slice %5 {offsets = [0, 0], sizes = [1, 256], strides = [1, 1]} : vector<4x256xf32> to vector<1x256xf32>
    %8 = vector.broadcast %6 : vector<8x1xf32> to vector<8x256xf32>
    %9 = vector.broadcast %7 : vector<1x256xf32> to vector<8x256xf32>
    %10 = arith.mulf %8, %9 : vector<8x256xf32>
    %11 = vector.extract_strided_slice %0 {offsets = [0, 1], sizes = [8, 1], strides = [1, 1]} : vector<8x4xf32> to vector<8x1xf32>
    %12 = vector.extract_strided_slice %5 {offsets = [1, 0], sizes = [1, 256], strides = [1, 1]} : vector<4x256xf32> to vector<1x256xf32>
    %13 = vector.broadcast %11 : vector<8x1xf32> to vector<8x256xf32>
    %14 = vector.broadcast %12 : vector<1x256xf32> to vector<8x256xf32>
    %15 = arith.mulf %13, %14 : vector<8x256xf32>
    %16 = arith.addf %10, %15 : vector<8x256xf32>
    %17 = vector.extract_strided_slice %0 {offsets = [0, 2], sizes = [8, 1], strides = [1, 1]} : vector<8x4xf32> to vector<8x1xf32>
    %18 = vector.extract_strided_slice %5 {offsets = [2, 0], sizes = [1, 256], strides = [1, 1]} : vector<4x256xf32> to vector<1x256xf32>
    %19 = vector.broadcast %17 : vector<8x1xf32> to vector<8x256xf32>
    %20 = vector.broadcast %18 : vector<1x256xf32> to vector<8x256xf32>
    %21 = arith.mulf %19, %20 : vector<8x256xf32>
    %22 = arith.addf %16, %21 : vector<8x256xf32>
    %23 = vector.extract_strided_slice %0 {offsets = [0, 3], sizes = [8, 1], strides = [1, 1]} : vector<8x4xf32> to vector<8x1xf32>
    %24 = vector.extract_strided_slice %5 {offsets = [3, 0], sizes = [1, 256], strides = [1, 1]} : vector<4x256xf32> to vector<1x256xf32>
    %25 = vector.broadcast %23 : vector<8x1xf32> to vector<8x256xf32>
    %26 = vector.broadcast %24 : vector<1x256xf32> to vector<8x256xf32>
    %27 = arith.mulf %25, %26 : vector<8x256xf32>
    %28 = arith.addf %22, %27 : vector<8x256xf32>
    %29 = vector.broadcast %1 : vector<8x1xf32> to vector<8x256xf32>
    %30 = arith.addf %28, %29 : vector<8x256xf32>
    %cst = arith.constant dense<0.000000e+00> : vector<8xf32>
    %31 = vector.multi_reduction <add>, %30, %cst [1] : vector<8x256xf32> to vector<8xf32>
    %32 = vector.shape_cast %31 : vector<8xf32> to vector<8x1xf32>
    %cst_10 = arith.constant 3.906250e-03 : f32
    %33 = vector.broadcast %cst_10 : f32 to vector<8x1xf32>
    %34 = arith.mulf %32, %33 : vector<8x1xf32>
    %35 = vector.broadcast %34 : vector<8x1xf32> to vector<8x256xf32>
    %36 = arith.subf %30, %35 : vector<8x256xf32>
    %37 = arith.mulf %36, %36 : vector<8x256xf32>
    %cst_11 = arith.constant dense<0.000000e+00> : vector<8xf32>
    %38 = vector.multi_reduction <add>, %37, %cst_11 [1] : vector<8x256xf32> to vector<8xf32>
    %39 = vector.shape_cast %38 : vector<8xf32> to vector<8x1xf32>
    %cst_12 = arith.constant 3.906250e-03 : f32
    %40 = vector.broadcast %cst_12 : f32 to vector<8x1xf32>
    %41 = arith.mulf %39, %40 : vector<8x1xf32>
    %cst_13 = arith.constant 9.99999974E-6 : f32
    %42 = vector.broadcast %cst_13 : f32 to vector<8x1xf32>
    %43 = arith.addf %41, %42 : vector<8x1xf32>
    %44 = math.rsqrt %43 : vector<8x1xf32>
    %45 = vector.broadcast %44 : vector<8x1xf32> to vector<8x256xf32>
    %46 = arith.mulf %36, %45 : vector<8x256xf32>
    %cst_14 = arith.constant 9.99999974E-6 : f32
    %47 = vector.broadcast %cst_14 : f32 to vector<8x1xf32>
    %48 = arith.addf %41, %47 : vector<8x1xf32>
    %49 = arith.divf %41, %48 : vector<8x1xf32>
    %c1 = arith.constant 1 : index
    %c0_15 = arith.constant 0 : index
    %c0_16 = arith.constant 0 : index
    %50 = vector.load %arg0[%c1, %c0_15, %c0_16] : memref<2x4x256xf32, #tpu.memory_space<vmem>>, vector<1x4x256xf32>
    %51 = vector.shape_cast %50 : vector<1x4x256xf32> to vector<4x256xf32>
    %52 = vector.extract_strided_slice %0 {offsets = [0, 0], sizes = [8, 1], strides = [1, 1]} : vector<8x4xf32> to vector<8x1xf32>
    %53 = vector.extract_strided_slice %51 {offsets = [0, 0], sizes = [1, 256], strides = [1, 1]} : vector<4x256xf32> to vector<1x256xf32>
    %54 = vector.broadcast %52 : vector<8x1xf32> to vector<8x256xf32>
    %55 = vector.broadcast %53 : vector<1x256xf32> to vector<8x256xf32>
    %56 = arith.mulf %54, %55 : vector<8x256xf32>
    %57 = vector.extract_strided_slice %0 {offsets = [0, 1], sizes = [8, 1], strides = [1, 1]} : vector<8x4xf32> to vector<8x1xf32>
    %58 = vector.extract_strided_slice %51 {offsets = [1, 0], sizes = [1, 256], strides = [1, 1]} : vector<4x256xf32> to vector<1x256xf32>
    %59 = vector.broadcast %57 : vector<8x1xf32> to vector<8x256xf32>
    %60 = vector.broadcast %58 : vector<1x256xf32> to vector<8x256xf32>
    %61 = arith.mulf %59, %60 : vector<8x256xf32>
    %62 = arith.addf %56, %61 : vector<8x256xf32>
    %63 = vector.extract_strided_slice %0 {offsets = [0, 2], sizes = [8, 1], strides = [1, 1]} : vector<8x4xf32> to vector<8x1xf32>
    %64 = vector.extract_strided_slice %51 {offsets = [2, 0], sizes = [1, 256], strides = [1, 1]} : vector<4x256xf32> to vector<1x256xf32>
    %65 = vector.broadcast %63 : vector<8x1xf32> to vector<8x256xf32>
    %66 = vector.broadcast %64 : vector<1x256xf32> to vector<8x256xf32>
    %67 = arith.mulf %65, %66 : vector<8x256xf32>
    %68 = arith.addf %62, %67 : vector<8x256xf32>
    %69 = vector.extract_strided_slice %0 {offsets = [0, 3], sizes = [8, 1], strides = [1, 1]} : vector<8x4xf32> to vector<8x1xf32>
    %70 = vector.extract_strided_slice %51 {offsets = [3, 0], sizes = [1, 256], strides = [1, 1]} : vector<4x256xf32> to vector<1x256xf32>
    %71 = vector.broadcast %69 : vector<8x1xf32> to vector<8x256xf32>
    %72 = vector.broadcast %70 : vector<1x256xf32> to vector<8x256xf32>
    %73 = arith.mulf %71, %72 : vector<8x256xf32>
    %74 = arith.addf %68, %73 : vector<8x256xf32>
    %75 = vector.broadcast %1 : vector<8x1xf32> to vector<8x256xf32>
    %76 = arith.addf %74, %75 : vector<8x256xf32>
    %cst_17 = arith.constant dense<0.000000e+00> : vector<8xf32>
    %77 = vector.multi_reduction <add>, %76, %cst_17 [1] : vector<8x256xf32> to vector<8xf32>
    %78 = vector.shape_cast %77 : vector<8xf32> to vector<8x1xf32>
    %cst_18 = arith.constant 3.906250e-03 : f32
    %79 = vector.broadcast %cst_18 : f32 to vector<8x1xf32>
    %80 = arith.mulf %78, %79 : vector<8x1xf32>
    %81 = vector.broadcast %80 : vector<8x1xf32> to vector<8x256xf32>
    %82 = arith.subf %76, %81 : vector<8x256xf32>
    %83 = arith.mulf %82, %82 : vector<8x256xf32>
    %cst_19 = arith.constant dense<0.000000e+00> : vector<8xf32>
    %84 = vector.multi_reduction <add>, %83, %cst_19 [1] : vector<8x256xf32> to vector<8xf32>
    %85 = vector.shape_cast %84 : vector<8xf32> to vector<8x1xf32>
    %cst_20 = arith.constant 3.906250e-03 : f32
    %86 = vector.broadcast %cst_20 : f32 to vector<8x1xf32>
    %87 = arith.mulf %85, %86 : vector<8x1xf32>
    %cst_21 = arith.constant 9.99999974E-6 : f32
    %88 = vector.broadcast %cst_21 : f32 to vector<8x1xf32>
    %89 = arith.addf %87, %88 : vector<8x1xf32>
    %90 = math.rsqrt %89 : vector<8x1xf32>
    %91 = vector.broadcast %90 : vector<8x1xf32> to vector<8x256xf32>
    %92 = arith.mulf %82, %91 : vector<8x256xf32>
    %cst_22 = arith.constant 9.99999974E-6 : f32
    %93 = vector.broadcast %cst_22 : f32 to vector<8x1xf32>
    %94 = arith.addf %87, %93 : vector<8x1xf32>
    %95 = arith.divf %87, %94 : vector<8x1xf32>
    %96 = arith.addf %49, %95 : vector<8x1xf32>
    %c0_23 = arith.constant 0 : index
    %c0_24 = arith.constant 0 : index
    %97 = vector.load %arg3[%c0_23, %c0_24] : memref<8x1xf32, #tpu.memory_space<vmem>>, vector<8x1xf32>
    %cst_25 = arith.constant 5.000000e-01 : f32
    %98 = vector.broadcast %cst_25 : f32 to vector<8x1xf32>
    %99 = arith.mulf %96, %98 : vector<8x1xf32>
    %cst_26 = arith.constant 9.99999974E-6 : f32
    %100 = vector.broadcast %cst_26 : f32 to vector<8x1xf32>
    %101 = arith.addf %99, %100 : vector<8x1xf32>
    %102 = math.rsqrt %101 : vector<8x1xf32>
    %103 = arith.mulf %97, %102 : vector<8x1xf32>
    %c0_27 = arith.constant 0 : index
    %c0_28 = arith.constant 0 : index
    %104 = vector.load %arg4[%c0_27, %c0_28] : memref<8x1xf32, #tpu.memory_space<vmem>>, vector<8x1xf32>
    %105 = vector.broadcast %103 : vector<8x1xf32> to vector<8x256xf32>
    %106 = arith.mulf %46, %105 : vector<8x256xf32>
    %107 = vector.broadcast %104 : vector<8x1xf32> to vector<8x256xf32>
    %108 = arith.addf %106, %107 : vector<8x256xf32>
    %cst_29 = arith.constant 0.000000e+00 : f32
    %109 = vector.broadcast %cst_29 : f32 to vector<8x256xf32>
    %110 = arith.maximumf %108, %109 : vector<8x256xf32>
    %111 = vector.extract_strided_slice %2 {offsets = [0, 0], sizes = [8, 1], strides = [1, 1]} : vector<8x8xf32> to vector<8x1xf32>
    %112 = vector.extract_strided_slice %110 {offsets = [0, 0], sizes = [1, 256], strides = [1, 1]} : vector<8x256xf32> to vector<1x256xf32>
    %113 = vector.broadcast %111 : vector<8x1xf32> to vector<8x256xf32>
    %114 = vector.broadcast %112 : vector<1x256xf32> to vector<8x256xf32>
    %115 = arith.mulf %113, %114 : vector<8x256xf32>
    %116 = vector.extract_strided_slice %2 {offsets = [0, 1], sizes = [8, 1], strides = [1, 1]} : vector<8x8xf32> to vector<8x1xf32>
    %117 = vector.extract_strided_slice %110 {offsets = [1, 0], sizes = [1, 256], strides = [1, 1]} : vector<8x256xf32> to vector<1x256xf32>
    %118 = vector.broadcast %116 : vector<8x1xf32> to vector<8x256xf32>
    %119 = vector.broadcast %117 : vector<1x256xf32> to vector<8x256xf32>
    %120 = arith.mulf %118, %119 : vector<8x256xf32>
    %121 = arith.addf %115, %120 : vector<8x256xf32>
    %122 = vector.extract_strided_slice %2 {offsets = [0, 2], sizes = [8, 1], strides = [1, 1]} : vector<8x8xf32> to vector<8x1xf32>
    %123 = vector.extract_strided_slice %110 {offsets = [2, 0], sizes = [1, 256], strides = [1, 1]} : vector<8x256xf32> to vector<1x256xf32>
    %124 = vector.broadcast %122 : vector<8x1xf32> to vector<8x256xf32>
    %125 = vector.broadcast %123 : vector<1x256xf32> to vector<8x256xf32>
    %126 = arith.mulf %124, %125 : vector<8x256xf32>
    %127 = arith.addf %121, %126 : vector<8x256xf32>
    %128 = vector.extract_strided_slice %2 {offsets = [0, 3], sizes = [8, 1], strides = [1, 1]} : vector<8x8xf32> to vector<8x1xf32>
    %129 = vector.extract_strided_slice %110 {offsets = [3, 0], sizes = [1, 256], strides = [1, 1]} : vector<8x256xf32> to vector<1x256xf32>
    %130 = vector.broadcast %128 : vector<8x1xf32> to vector<8x256xf32>
    %131 = vector.broadcast %129 : vector<1x256xf32> to vector<8x256xf32>
    %132 = arith.mulf %130, %131 : vector<8x256xf32>
    %133 = arith.addf %127, %132 : vector<8x256xf32>
    %134 = vector.extract_strided_slice %2 {offsets = [0, 4], sizes = [8, 1], strides = [1, 1]} : vector<8x8xf32> to vector<8x1xf32>
    %135 = vector.extract_strided_slice %110 {offsets = [4, 0], sizes = [1, 256], strides = [1, 1]} : vector<8x256xf32> to vector<1x256xf32>
    %136 = vector.broadcast %134 : vector<8x1xf32> to vector<8x256xf32>
    %137 = vector.broadcast %135 : vector<1x256xf32> to vector<8x256xf32>
    %138 = arith.mulf %136, %137 : vector<8x256xf32>
    %139 = arith.addf %133, %138 : vector<8x256xf32>
    %140 = vector.extract_strided_slice %2 {offsets = [0, 5], sizes = [8, 1], strides = [1, 1]} : vector<8x8xf32> to vector<8x1xf32>
    %141 = vector.extract_strided_slice %110 {offsets = [5, 0], sizes = [1, 256], strides = [1, 1]} : vector<8x256xf32> to vector<1x256xf32>
    %142 = vector.broadcast %140 : vector<8x1xf32> to vector<8x256xf32>
    %143 = vector.broadcast %141 : vector<1x256xf32> to vector<8x256xf32>
    %144 = arith.mulf %142, %143 : vector<8x256xf32>
    %145 = arith.addf %139, %144 : vector<8x256xf32>
    %146 = vector.extract_strided_slice %2 {offsets = [0, 6], sizes = [8, 1], strides = [1, 1]} : vector<8x8xf32> to vector<8x1xf32>
    %147 = vector.extract_strided_slice %110 {offsets = [6, 0], sizes = [1, 256], strides = [1, 1]} : vector<8x256xf32> to vector<1x256xf32>
    %148 = vector.broadcast %146 : vector<8x1xf32> to vector<8x256xf32>
    %149 = vector.broadcast %147 : vector<1x256xf32> to vector<8x256xf32>
    %150 = arith.mulf %148, %149 : vector<8x256xf32>
    %151 = arith.addf %145, %150 : vector<8x256xf32>
    %152 = vector.extract_strided_slice %2 {offsets = [0, 7], sizes = [8, 1], strides = [1, 1]} : vector<8x8xf32> to vector<8x1xf32>
    %153 = vector.extract_strided_slice %110 {offsets = [7, 0], sizes = [1, 256], strides = [1, 1]} : vector<8x256xf32> to vector<1x256xf32>
    %154 = vector.broadcast %152 : vector<8x1xf32> to vector<8x256xf32>
    %155 = vector.broadcast %153 : vector<1x256xf32> to vector<8x256xf32>
    %156 = arith.mulf %154, %155 : vector<8x256xf32>
    %157 = arith.addf %151, %156 : vector<8x256xf32>
    %158 = vector.broadcast %3 : vector<8x1xf32> to vector<8x256xf32>
    %159 = arith.addf %157, %158 : vector<8x256xf32>
    %cst_30 = arith.constant dense<0.000000e+00> : vector<8xf32>
    %160 = vector.multi_reduction <add>, %159, %cst_30 [1] : vector<8x256xf32> to vector<8xf32>
    %161 = vector.shape_cast %160 : vector<8xf32> to vector<8x1xf32>
    %cst_31 = arith.constant 3.906250e-03 : f32
    %162 = vector.broadcast %cst_31 : f32 to vector<8x1xf32>
    %163 = arith.mulf %161, %162 : vector<8x1xf32>
    %164 = vector.broadcast %163 : vector<8x1xf32> to vector<8x256xf32>
    %165 = arith.subf %159, %164 : vector<8x256xf32>
    %166 = arith.mulf %165, %165 : vector<8x256xf32>
    %cst_32 = arith.constant dense<0.000000e+00> : vector<8xf32>
    %167 = vector.multi_reduction <add>, %166, %cst_32 [1] : vector<8x256xf32> to vector<8xf32>
    %168 = vector.shape_cast %167 : vector<8xf32> to vector<8x1xf32>
    %cst_33 = arith.constant 3.906250e-03 : f32
    %169 = vector.broadcast %cst_33 : f32 to vector<8x1xf32>
    %170 = arith.mulf %168, %169 : vector<8x1xf32>
    %cst_34 = arith.constant 9.99999974E-6 : f32
    %171 = vector.broadcast %cst_34 : f32 to vector<8x1xf32>
    %172 = arith.addf %170, %171 : vector<8x1xf32>
    %173 = math.rsqrt %172 : vector<8x1xf32>
    %174 = vector.broadcast %173 : vector<8x1xf32> to vector<8x256xf32>
    %175 = arith.mulf %165, %174 : vector<8x256xf32>
    %cst_35 = arith.constant 9.99999974E-6 : f32
    %176 = vector.broadcast %cst_35 : f32 to vector<8x1xf32>
    %177 = arith.addf %170, %176 : vector<8x1xf32>
    %178 = arith.divf %170, %177 : vector<8x1xf32>
    %179 = vector.broadcast %103 : vector<8x1xf32> to vector<8x256xf32>
    %180 = arith.mulf %92, %179 : vector<8x256xf32>
    %181 = vector.broadcast %104 : vector<8x1xf32> to vector<8x256xf32>
    %182 = arith.addf %180, %181 : vector<8x256xf32>
    %cst_36 = arith.constant 0.000000e+00 : f32
    %183 = vector.broadcast %cst_36 : f32 to vector<8x256xf32>
    %184 = arith.maximumf %182, %183 : vector<8x256xf32>
    %185 = vector.extract_strided_slice %2 {offsets = [0, 0], sizes = [8, 1], strides = [1, 1]} : vector<8x8xf32> to vector<8x1xf32>
    %186 = vector.extract_strided_slice %184 {offsets = [0, 0], sizes = [1, 256], strides = [1, 1]} : vector<8x256xf32> to vector<1x256xf32>
    %187 = vector.broadcast %185 : vector<8x1xf32> to vector<8x256xf32>
    %188 = vector.broadcast %186 : vector<1x256xf32> to vector<8x256xf32>
    %189 = arith.mulf %187, %188 : vector<8x256xf32>
    %190 = vector.extract_strided_slice %2 {offsets = [0, 1], sizes = [8, 1], strides = [1, 1]} : vector<8x8xf32> to vector<8x1xf32>
    %191 = vector.extract_strided_slice %184 {offsets = [1, 0], sizes = [1, 256], strides = [1, 1]} : vector<8x256xf32> to vector<1x256xf32>
    %192 = vector.broadcast %190 : vector<8x1xf32> to vector<8x256xf32>
    %193 = vector.broadcast %191 : vector<1x256xf32> to vector<8x256xf32>
    %194 = arith.mulf %192, %193 : vector<8x256xf32>
    %195 = arith.addf %189, %194 : vector<8x256xf32>
    %196 = vector.extract_strided_slice %2 {offsets = [0, 2], sizes = [8, 1], strides = [1, 1]} : vector<8x8xf32> to vector<8x1xf32>
    %197 = vector.extract_strided_slice %184 {offsets = [2, 0], sizes = [1, 256], strides = [1, 1]} : vector<8x256xf32> to vector<1x256xf32>
    %198 = vector.broadcast %196 : vector<8x1xf32> to vector<8x256xf32>
    %199 = vector.broadcast %197 : vector<1x256xf32> to vector<8x256xf32>
    %200 = arith.mulf %198, %199 : vector<8x256xf32>
    %201 = arith.addf %195, %200 : vector<8x256xf32>
    %202 = vector.extract_strided_slice %2 {offsets = [0, 3], sizes = [8, 1], strides = [1, 1]} : vector<8x8xf32> to vector<8x1xf32>
    %203 = vector.extract_strided_slice %184 {offsets = [3, 0], sizes = [1, 256], strides = [1, 1]} : vector<8x256xf32> to vector<1x256xf32>
    %204 = vector.broadcast %202 : vector<8x1xf32> to vector<8x256xf32>
    %205 = vector.broadcast %203 : vector<1x256xf32> to vector<8x256xf32>
    %206 = arith.mulf %204, %205 : vector<8x256xf32>
    %207 = arith.addf %201, %206 : vector<8x256xf32>
    %208 = vector.extract_strided_slice %2 {offsets = [0, 4], sizes = [8, 1], strides = [1, 1]} : vector<8x8xf32> to vector<8x1xf32>
    %209 = vector.extract_strided_slice %184 {offsets = [4, 0], sizes = [1, 256], strides = [1, 1]} : vector<8x256xf32> to vector<1x256xf32>
    %210 = vector.broadcast %208 : vector<8x1xf32> to vector<8x256xf32>
    %211 = vector.broadcast %209 : vector<1x256xf32> to vector<8x256xf32>
    %212 = arith.mulf %210, %211 : vector<8x256xf32>
    %213 = arith.addf %207, %212 : vector<8x256xf32>
    %214 = vector.extract_strided_slice %2 {offsets = [0, 5], sizes = [8, 1], strides = [1, 1]} : vector<8x8xf32> to vector<8x1xf32>
    %215 = vector.extract_strided_slice %184 {offsets = [5, 0], sizes = [1, 256], strides = [1, 1]} : vector<8x256xf32> to vector<1x256xf32>
    %216 = vector.broadcast %214 : vector<8x1xf32> to vector<8x256xf32>
    %217 = vector.broadcast %215 : vector<1x256xf32> to vector<8x256xf32>
    %218 = arith.mulf %216, %217 : vector<8x256xf32>
    %219 = arith.addf %213, %218 : vector<8x256xf32>
    %220 = vector.extract_strided_slice %2 {offsets = [0, 6], sizes = [8, 1], strides = [1, 1]} : vector<8x8xf32> to vector<8x1xf32>
    %221 = vector.extract_strided_slice %184 {offsets = [6, 0], sizes = [1, 256], strides = [1, 1]} : vector<8x256xf32> to vector<1x256xf32>
    %222 = vector.broadcast %220 : vector<8x1xf32> to vector<8x256xf32>
    %223 = vector.broadcast %221 : vector<1x256xf32> to vector<8x256xf32>
    %224 = arith.mulf %222, %223 : vector<8x256xf32>
    %225 = arith.addf %219, %224 : vector<8x256xf32>
    %226 = vector.extract_strided_slice %2 {offsets = [0, 7], sizes = [8, 1], strides = [1, 1]} : vector<8x8xf32> to vector<8x1xf32>
    %227 = vector.extract_strided_slice %184 {offsets = [7, 0], sizes = [1, 256], strides = [1, 1]} : vector<8x256xf32> to vector<1x256xf32>
    %228 = vector.broadcast %226 : vector<8x1xf32> to vector<8x256xf32>
    %229 = vector.broadcast %227 : vector<1x256xf32> to vector<8x256xf32>
    %230 = arith.mulf %228, %229 : vector<8x256xf32>
    %231 = arith.addf %225, %230 : vector<8x256xf32>
    %232 = vector.broadcast %3 : vector<8x1xf32> to vector<8x256xf32>
    %233 = arith.addf %231, %232 : vector<8x256xf32>
    %cst_37 = arith.constant dense<0.000000e+00> : vector<8xf32>
    %234 = vector.multi_reduction <add>, %233, %cst_37 [1] : vector<8x256xf32> to vector<8xf32>
    %235 = vector.shape_cast %234 : vector<8xf32> to vector<8x1xf32>
    %cst_38 = arith.constant 3.906250e-03 : f32
    %236 = vector.broadcast %cst_38 : f32 to vector<8x1xf32>
    %237 = arith.mulf %235, %236 : vector<8x1xf32>
    %238 = vector.broadcast %237 : vector<8x1xf32> to vector<8x256xf32>
    %239 = arith.subf %233, %238 : vector<8x256xf32>
    %240 = arith.mulf %239, %239 : vector<8x256xf32>
    %cst_39 = arith.constant dense<0.000000e+00> : vector<8xf32>
    %241 = vector.multi_reduction <add>, %240, %cst_39 [1] : vector<8x256xf32> to vector<8xf32>
    %242 = vector.shape_cast %241 : vector<8xf32> to vector<8x1xf32>
    %cst_40 = arith.constant 3.906250e-03 : f32
    %243 = vector.broadcast %cst_40 : f32 to vector<8x1xf32>
    %244 = arith.mulf %242, %243 : vector<8x1xf32>
    %cst_41 = arith.constant 9.99999974E-6 : f32
    %245 = vector.broadcast %cst_41 : f32 to vector<8x1xf32>
    %246 = arith.addf %244, %245 : vector<8x1xf32>
    %247 = math.rsqrt %246 : vector<8x1xf32>
    %248 = vector.broadcast %247 : vector<8x1xf32> to vector<8x256xf32>
    %249 = arith.mulf %239, %248 : vector<8x256xf32>
    %cst_42 = arith.constant 9.99999974E-6 : f32
    %250 = vector.broadcast %cst_42 : f32 to vector<8x1xf32>
    %251 = arith.addf %244, %250 : vector<8x1xf32>
    %252 = arith.divf %244, %251 : vector<8x1xf32>
    %253 = arith.addf %178, %252 : vector<8x1xf32>
    %c0_43 = arith.constant 0 : index
    %c0_44 = arith.constant 0 : index
    %254 = vector.load %arg7[%c0_43, %c0_44] : memref<8x1xf32, #tpu.memory_space<vmem>>, vector<8x1xf32>
    %cst_45 = arith.constant 5.000000e-01 : f32
    %255 = vector.broadcast %cst_45 : f32 to vector<8x1xf32>
    %256 = arith.mulf %253, %255 : vector<8x1xf32>
    %cst_46 = arith.constant 9.99999974E-6 : f32
    %257 = vector.broadcast %cst_46 : f32 to vector<8x1xf32>
    %258 = arith.addf %256, %257 : vector<8x1xf32>
    %259 = math.rsqrt %258 : vector<8x1xf32>
    %260 = arith.mulf %254, %259 : vector<8x1xf32>
    %c0_47 = arith.constant 0 : index
    %c0_48 = arith.constant 0 : index
    %261 = vector.load %arg8[%c0_47, %c0_48] : memref<8x1xf32, #tpu.memory_space<vmem>>, vector<8x1xf32>
    %c0_49 = arith.constant 0 : index
    %c0_50 = arith.constant 0 : index
    %262 = vector.load %arg9[%c0_49, %c0_50] : memref<8x4xf32, #tpu.memory_space<vmem>>, vector<8x4xf32>
    %c0_51 = arith.constant 0 : index
    %c0_52 = arith.constant 0 : index
    %263 = vector.load %arg10[%c0_51, %c0_52] : memref<8x1xf32, #tpu.memory_space<vmem>>, vector<8x1xf32>
    %c0_53 = arith.constant 0 : index
    %c0_54 = arith.constant 0 : index
    %c0_55 = arith.constant 0 : index
    %264 = vector.load %arg0[%c0_53, %c0_54, %c0_55] : memref<2x4x256xf32, #tpu.memory_space<vmem>>, vector<1x4x256xf32>
    %265 = vector.shape_cast %264 : vector<1x4x256xf32> to vector<4x256xf32>
    %266 = vector.extract_strided_slice %262 {offsets = [0, 0], sizes = [8, 1], strides = [1, 1]} : vector<8x4xf32> to vector<8x1xf32>
    %267 = vector.extract_strided_slice %265 {offsets = [0, 0], sizes = [1, 256], strides = [1, 1]} : vector<4x256xf32> to vector<1x256xf32>
    %268 = vector.broadcast %266 : vector<8x1xf32> to vector<8x256xf32>
    %269 = vector.broadcast %267 : vector<1x256xf32> to vector<8x256xf32>
    %270 = arith.mulf %268, %269 : vector<8x256xf32>
    %271 = vector.extract_strided_slice %262 {offsets = [0, 1], sizes = [8, 1], strides = [1, 1]} : vector<8x4xf32> to vector<8x1xf32>
    %272 = vector.extract_strided_slice %265 {offsets = [1, 0], sizes = [1, 256], strides = [1, 1]} : vector<4x256xf32> to vector<1x256xf32>
    %273 = vector.broadcast %271 : vector<8x1xf32> to vector<8x256xf32>
    %274 = vector.broadcast %272 : vector<1x256xf32> to vector<8x256xf32>
    %275 = arith.mulf %273, %274 : vector<8x256xf32>
    %276 = arith.addf %270, %275 : vector<8x256xf32>
    %277 = vector.extract_strided_slice %262 {offsets = [0, 2], sizes = [8, 1], strides = [1, 1]} : vector<8x4xf32> to vector<8x1xf32>
    %278 = vector.extract_strided_slice %265 {offsets = [2, 0], sizes = [1, 256], strides = [1, 1]} : vector<4x256xf32> to vector<1x256xf32>
    %279 = vector.broadcast %277 : vector<8x1xf32> to vector<8x256xf32>
    %280 = vector.broadcast %278 : vector<1x256xf32> to vector<8x256xf32>
    %281 = arith.mulf %279, %280 : vector<8x256xf32>
    %282 = arith.addf %276, %281 : vector<8x256xf32>
    %283 = vector.extract_strided_slice %262 {offsets = [0, 3], sizes = [8, 1], strides = [1, 1]} : vector<8x4xf32> to vector<8x1xf32>
    %284 = vector.extract_strided_slice %265 {offsets = [3, 0], sizes = [1, 256], strides = [1, 1]} : vector<4x256xf32> to vector<1x256xf32>
    %285 = vector.broadcast %283 : vector<8x1xf32> to vector<8x256xf32>
    %286 = vector.broadcast %284 : vector<1x256xf32> to vector<8x256xf32>
    %287 = arith.mulf %285, %286 : vector<8x256xf32>
    %288 = arith.addf %282, %287 : vector<8x256xf32>
    %289 = vector.broadcast %263 : vector<8x1xf32> to vector<8x256xf32>
    %290 = arith.addf %288, %289 : vector<8x256xf32>
    %291 = vector.broadcast %260 : vector<8x1xf32> to vector<8x256xf32>
    %292 = arith.mulf %175, %291 : vector<8x256xf32>
    %293 = vector.broadcast %261 : vector<8x1xf32> to vector<8x256xf32>
    %294 = arith.addf %292, %293 : vector<8x256xf32>
    %295 = arith.addf %294, %290 : vector<8x256xf32>
    %cst_56 = arith.constant 0.000000e+00 : f32
    %296 = vector.broadcast %cst_56 : f32 to vector<8x256xf32>
    %297 = arith.maximumf %295, %296 : vector<8x256xf32>
    %c0_57 = arith.constant 0 : index
    %c0_58 = arith.constant 0 : index
    %c0_59 = arith.constant 0 : index
    %298 = vector.load %arg11[%c0_57, %c0_58, %c0_59] : memref<2x8x256xf32, #tpu.memory_space<vmem>>, vector<1x8x256xf32>
    %299 = vector.shape_cast %298 : vector<1x8x256xf32> to vector<8x256xf32>
    %300 = vector.shape_cast %297 : vector<8x256xf32> to vector<1x8x256xf32>
    tpu.vector_store %arg11[%c0_57, %c0_58, %c0_59], %300 {strides = array<i32>} : memref<2x8x256xf32, #tpu.memory_space<vmem>>, vector<1x8x256xf32>,
    %c1_60 = arith.constant 1 : index
    %c0_61 = arith.constant 0 : index
    %c0_62 = arith.constant 0 : index
    %301 = vector.load %arg0[%c1_60, %c0_61, %c0_62] : memref<2x4x256xf32, #tpu.memory_space<vmem>>, vector<1x4x256xf32>
    %302 = vector.shape_cast %301 : vector<1x4x256xf32> to vector<4x256xf32>
    %303 = vector.extract_strided_slice %262 {offsets = [0, 0], sizes = [8, 1], strides = [1, 1]} : vector<8x4xf32> to vector<8x1xf32>
    %304 = vector.extract_strided_slice %302 {offsets = [0, 0], sizes = [1, 256], strides = [1, 1]} : vector<4x256xf32> to vector<1x256xf32>
    %305 = vector.broadcast %303 : vector<8x1xf32> to vector<8x256xf32>
    %306 = vector.broadcast %304 : vector<1x256xf32> to vector<8x256xf32>
    %307 = arith.mulf %305, %306 : vector<8x256xf32>
    %308 = vector.extract_strided_slice %262 {offsets = [0, 1], sizes = [8, 1], strides = [1, 1]} : vector<8x4xf32> to vector<8x1xf32>
    %309 = vector.extract_strided_slice %302 {offsets = [1, 0], sizes = [1, 256], strides = [1, 1]} : vector<4x256xf32> to vector<1x256xf32>
    %310 = vector.broadcast %308 : vector<8x1xf32> to vector<8x256xf32>
    %311 = vector.broadcast %309 : vector<1x256xf32> to vector<8x256xf32>
    %312 = arith.mulf %310, %311 : vector<8x256xf32>
    %313 = arith.addf %307, %312 : vector<8x256xf32>
    %314 = vector.extract_strided_slice %262 {offsets = [0, 2], sizes = [8, 1], strides = [1, 1]} : vector<8x4xf32> to vector<8x1xf32>
    %315 = vector.extract_strided_slice %302 {offsets = [2, 0], sizes = [1, 256], strides = [1, 1]} : vector<4x256xf32> to vector<1x256xf32>
    %316 = vector.broadcast %314 : vector<8x1xf32> to vector<8x256xf32>
    %317 = vector.broadcast %315 : vector<1x256xf32> to vector<8x256xf32>
    %318 = arith.mulf %316, %317 : vector<8x256xf32>
    %319 = arith.addf %313, %318 : vector<8x256xf32>
    %320 = vector.extract_strided_slice %262 {offsets = [0, 3], sizes = [8, 1], strides = [1, 1]} : vector<8x4xf32> to vector<8x1xf32>
    %321 = vector.extract_strided_slice %302 {offsets = [3, 0], sizes = [1, 256], strides = [1, 1]} : vector<4x256xf32> to vector<1x256xf32>
    %322 = vector.broadcast %320 : vector<8x1xf32> to vector<8x256xf32>
    %323 = vector.broadcast %321 : vector<1x256xf32> to vector<8x256xf32>
    %324 = arith.mulf %322, %323 : vector<8x256xf32>
    %325 = arith.addf %319, %324 : vector<8x256xf32>
    %326 = vector.broadcast %263 : vector<8x1xf32> to vector<8x256xf32>
    %327 = arith.addf %325, %326 : vector<8x256xf32>
    %328 = vector.broadcast %260 : vector<8x1xf32> to vector<8x256xf32>
    %329 = arith.mulf %249, %328 : vector<8x256xf32>
    %330 = vector.broadcast %261 : vector<8x1xf32> to vector<8x256xf32>
    %331 = arith.addf %329, %330 : vector<8x256xf32>
    %332 = arith.addf %331, %327 : vector<8x256xf32>
    %cst_63 = arith.constant 0.000000e+00 : f32
    %333 = vector.broadcast %cst_63 : f32 to vector<8x256xf32>
    %334 = arith.maximumf %332, %333 : vector<8x256xf32>
    %c1_64 = arith.constant 1 : index
    %c0_65 = arith.constant 0 : index
    %c0_66 = arith.constant 0 : index
    %335 = vector.load %arg11[%c1_64, %c0_65, %c0_66] : memref<2x8x256xf32, #tpu.memory_space<vmem>>, vector<1x8x256xf32>
    %336 = vector.shape_cast %335 : vector<1x8x256xf32> to vector<8x256xf32>
    %337 = vector.shape_cast %334 : vector<8x256xf32> to vector<1x8x256xf32>
    tpu.vector_store %arg11[%c1_64, %c0_65, %c0_66], %337 {strides = array<i32>} : memref<2x8x256xf32, #tpu.memory_space<vmem>>, vector<1x8x256xf32>,
    return
  }
}

</mosaic_0001>

<bundles_post_ra>
// kernel: resnet_block_forward.1
= control target key start
LH: loop header
LB: loop body
LE: loop exit
PB: predicated region body
PF: predicated region fallthrough
CT: control target
= control target key end

     0   :  { %v799_v0 = vmov 0   ;;  %v800_v2 = vmov 2   ;;  %v801_v3 = vmov 1   ;;  %v802_v4 = vmov 3   ;;  %s1144_s1 = inlined_call_operand.vmem [shape: f32[8,4], index: 1, kind: input, shape index: {}]   ;;  %s1145_s2 = inlined_call_operand.vmem [shape: f32[8,1], index: 2, kind: input, shape index: {}]   ;;  %s1146_s0 = inlined_call_operand.vmem [shape: f32[2,4,256], index: 0, kind: input, shape index: {}]   ;;  %s1147_s5 = inlined_call_operand.vmem [shape: f32[8,8], index: 5, kind: input, shape index: {}]   ;;  %s1148_s4 = inlined_call_operand.vmem [shape: f32[8,1], index: 4, kind: input, shape index: {}]   ;;  %s1149_s6 = inlined_call_operand.vmem [shape: f32[8,1], index: 6, kind: input, shape index: {}]   ;;  %s1150_s3 = inlined_call_operand.vmem [shape: f32[8,1], index: 3, kind: input, shape index: {}]   ;;  %s1151_s9 = inlined_call_operand.vmem [shape: f32[8,4], index: 9, kind: input, shape index: {}]   ;;  %s1152_s8 = inlined_call_operand.vmem [shape: f32[8,1], index: 8, kind: input, shape index: {}]   ;;  %s1153_s7 = inlined_call_operand.vmem [shape: f32[8,1], index: 7, kind: input, shape index: {}]   ;;  %s1154_s10 = inlined_call_operand.vmem [shape: f32[8,1], index: 10, kind: input, shape index: {}]   ;;  %s1155_s11 = inlined_call_operand.vmem [shape: f32[2,8,256], index: 11, kind: output, shape index: {}]  }
   0x1   :  { %760 = vset.pattern.permute.xlu0 %v799_v0  ;;  %v38_v1 = vld [vmem:[%s1144_s1] sm:$0xff]  ;;  %762 = vset.pattern.permute.xlu1 %v800_v2  ;;  %v49_v6 = vlaneseq  ;;  %v748_v11 = vld [vmem:[%s1146_s0 + $0x8] sm:$0xff] }
   0x2   :  { %45 = vperm.xlu0 %760, %v38_v1   ;;  %96 = vperm.xlu1 %762, %v38_v1   ;;  %v39_v5 = vld [vmem:[%s1145_s2] sm:$0xff] }
   0x3   :  { %v50_v7 = vshrl.u32 %v49_v6, 7  ;;  %v42_v10 = vld [vmem:[%s1146_s0] sm:$0xff] }
   0x5   :  { %v879_v8 = vsub.s32 0, %v50_v7  ;;  %v881_v9 = vsub.s32 4, %v50_v7  ;;  %v889_v12 = vsub.s32 2, %v50_v7  ;;  %v891_v13 = vsub.s32 6, %v50_v7 }
   0x6   :  { %761 = vset.pattern.permute.xlu0 %v801_v3  ;;  %763 = vset.pattern.permute.xlu1 %v802_v4  ;;  %v893_v14 = vsub.s32 1, %v50_v7  ;;  %v895_v15 = vsub.s32 5, %v50_v7  ;;  %v897_v16 = vsub.s32 3, %v50_v7  ;;  %v899_v17 = vsub.s32 7, %v50_v7 }
   0x7   :  { %70 = vperm.xlu0 %761, %v38_v1   ;;  %122 = vperm.xlu1 %763, %v38_v1   ;;  %v52_v18 = vrot.slane %v42_v10, %v879_v8  ;;  %v56_v19 = vrot.slane %v42_v10, %v881_v9  ;;  %v178_v20 = vrot.slane %v748_v11, %v879_v8 }
   0x8   :  { %v182_v21 = vrot.slane %v748_v11, %v881_v9  ;;  %v102_v22 = vrot.slane %v42_v10, %v889_v12  ;;  %v106_v23 = vrot.slane %v42_v10, %v891_v13  ;;  %v220_v24 = vrot.slane %v748_v11, %v889_v12 }
   0x9   :  { %v224_v25 = vrot.slane %v748_v11, %v891_v13  ;;  %v76_v26 = vrot.slane %v42_v10, %v893_v14  ;;  %v80_v27 = vrot.slane %v42_v10, %v895_v15  ;;  %v198_v28 = vrot.slane %v748_v11, %v893_v14 }
   0xa   :  { %v202_v29 = vrot.slane %v748_v11, %v895_v15  ;;  %v128_v30 = vrot.slane %v42_v10, %v897_v16  ;;  %v132_v31 = vrot.slane %v42_v10, %v899_v17  ;;  %v242_v32 = vrot.slane %v748_v11, %v897_v16 }
   0xb   :  { %764 = vset.pattern.permute.xlu1 %v799_v0  ;;  %765 = vset.pattern.permute.xlu0 %v799_v0  ;;  %v246_v33 = vrot.slane %v748_v11, %v899_v17  ;;  %v918_v35 = vrot.slane %v52_v18, %v879_v8  ;;  %v921_v36 = vrot.slane %v56_v19, %v879_v8 }
   0xc   :  { %149 = vperm.xlu1 %764, %v39_v5   ;;  %v924_v37 = vrot.slane %v178_v20, %v879_v8  ;;  %v927_v38 = vrot.slane %v182_v21, %v879_v8  ;;  %v930_v40 = vrot.slane %v102_v22, %v889_v12  ;;  %v933_v41 = vrot.slane %v106_v23, %v889_v12 }
   0xd   :  { %v936_v42 = vrot.slane %v220_v24, %v889_v12  ;;  %v939_v43 = vrot.slane %v224_v25, %v889_v12  ;;  %v942_v44 = vrot.slane %v76_v26, %v893_v14  ;;  %v945_v45 = vrot.slane %v80_v27, %v893_v14 }
   0xe   :  { %v948_v46 = vrot.slane %v198_v28, %v893_v14  ;;  %v951_v47 = vrot.slane %v202_v29, %v893_v14  ;;  %v954_v48 = vrot.slane %v128_v30, %v897_v16  ;;  %v957_v49 = vrot.slane %v132_v31, %v897_v16 }
   0xf   :  { %v960_v50 = vrot.slane %v242_v32, %v897_v16  ;;  %v963_v51 = vrot.slane %v246_v33, %v897_v16 }
  0x7d   :  { %v46_v34 = vpop.permute.xlu0 %45  ;;  %v97_v39 = vpop.permute.xlu1 %96 }
  0x7e   :  { %v67_v52 = vmul.f32 %v918_v35, %v46_v34  ;;  %v68_v53 = vmul.f32 %v921_v36, %v46_v34  ;;  %v193_v54 = vmul.f32 %v924_v37, %v46_v34  ;;  %v194_v55 = vmul.f32 %v927_v38, %v46_v34 }
  0x7f   :  { %v117_v56 = vmul.f32 %v930_v40, %v97_v39  ;;  %v118_v57 = vmul.f32 %v933_v41, %v97_v39  ;;  %v235_v58 = vmul.f32 %v936_v42, %v97_v39  ;;  %v236_v59 = vmul.f32 %v939_v43, %v97_v39 }
  0x82   :  { %v71_v60 = vpop.permute.xlu0 %70  ;;  %v123_v61 = vpop.permute.xlu1 %122 }
  0x83   :  { %v91_v62 = vmul.f32 %v942_v44, %v71_v60  ;;  %v92_v63 = vmul.f32 %v945_v45, %v71_v60  ;;  %v213_v1 = vmul.f32 %v948_v46, %v71_v60  ;;  %v214_v5 = vmul.f32 %v951_v47, %v71_v60 }
  0x84   :  { %v143_v6 = vmul.f32 %v954_v48, %v123_v61  ;;  %v144_v7 = vmul.f32 %v957_v49, %v123_v61  ;;  %v257_v10 = vmul.f32 %v960_v50, %v123_v61  ;;  %v258_v11 = vmul.f32 %v963_v51, %v123_v61 }
  0x85   :  { %v93_v18 = vadd.f32 %v91_v62, %v67_v52  ;;  %v94_v19 = vadd.f32 %v92_v63, %v68_v53  ;;  %v215_v20 = vadd.f32 %v213_v1, %v193_v54  ;;  %v216_v21 = vadd.f32 %v214_v5, %v194_v55  ;;  %v40_v52 = vld [vmem:[%s1147_s5] sm:$0xff] }
  0x87   :  { %v237_v22 = vadd.f32 %v235_v58, %v215_v20  ;;  %v238_v23 = vadd.f32 %v236_v59, %v216_v21  ;;  %v119_v24 = vadd.f32 %v117_v56, %v93_v18  ;;  %v120_v25 = vadd.f32 %v118_v57, %v94_v19  ;;  %v150_v26 = vpop.permute.xlu1 %149 }
  0x89   :  { %v259_v27 = vadd.f32 %v257_v10, %v237_v22  ;;  %v260_v28 = vadd.f32 %v258_v11, %v238_v23  ;;  %v145_v29 = vadd.f32 %v143_v6, %v119_v24  ;;  %v146_v30 = vadd.f32 %v144_v7, %v120_v25  ;;  %v287_v10 = vld [vmem:[%s1148_s4] sm:$0xff] }
  0x8a   :  { %v41_v11 = vld [vmem:[%s1149_s6] sm:$0xff] }
  0x8b   :  { %v261_v31 = vadd.f32 %v259_v27, %v150_v26  ;;  %v262_v32 = vadd.f32 %v260_v28, %v150_v26  ;;  %v152_v33 = vadd.f32 %v150_v26, %v145_v29  ;;  %v153_v34 = vadd.f32 %v150_v26, %v146_v30 }
  0x8d   :  { %v263_v39 = vadd.f32 %v262_v32, %v261_v31  ;;  %v154_v60 = vadd.f32 %v153_v34, %v152_v33 }
  0x8f   :  { %264 = vadd.xlane.f32.xlu1 %v263_v39  ;;  %155 = vadd.xlane.f32.xlu0 %v154_v60  ;;  %v804_v39 = vmov 5   ;;  %v805_v60 = vmov 6  }
  0xa0   :  { %306 = vperm.xlu1 %764, %v40_v52  }
  0xa4   :  { %766 = vset.pattern.permute.xlu1 %v801_v3 }
  0xa5   :  { %320 = vperm.xlu1 %766, %v40_v52  }
  0xa9   :  { %767 = vset.pattern.permute.xlu1 %v800_v2 }
  0xaa   :  { %336 = vperm.xlu1 %767, %v40_v52  }
  0xae   :  { %768 = vset.pattern.permute.xlu1 %v799_v0 }
 0x118   :  { %v265_v53 = vpop.xlane.xlu1 %264  ;;  %v156_v54 = vpop.xlane.xlu0 %155 }
 0x119   :  { %v266_v55 = vmul.f32 0.00390625, %v265_v53  ;;  %v157_v56 = vmul.f32 0.00390625, %v156_v54  ;;  %v806_v53 = vmov 7  }
 0x11b   :  { %v987_v57 = vsub.f32 %v261_v31, %v266_v55  ;;  %v989_v58 = vsub.f32 %v262_v32, %v266_v55  ;;  %v158_v59 = vsub.f32 %v152_v33, %v157_v56  ;;  %v159_v61 = vsub.f32 %v153_v34, %v157_v56  ;;  %v282_v31 = vld [vmem:[%s1150_s3] sm:$0xff] }
 0x11c   :  { %v803_v34 = vmov 4   ;;  %v307_v54 = vpop.permute.xlu1 %306 }
 0x11d   :  { %v160_v62 = vmul.f32 %v158_v59, %v158_v59  ;;  %v161_v63 = vmul.f32 %v159_v61, %v159_v61  ;;  %v269_v5 = vmul.f32 %v987_v57, %v987_v57  ;;  %v270_v6 = vmul.f32 %v989_v58, %v989_v58 }
 0x11f   :  { %v162_v1 = vadd.f32 %v161_v63, %v160_v62  ;;  %v271_v7 = vadd.f32 %v270_v6, %v269_v5 }
 0x120   :  { %v321_v55 = vpop.permute.xlu1 %320 }
 0x121   :  { %163 = vadd.xlane.f32.xlu0 %v162_v1 }
 0x125   :  { %272 = vadd.xlane.f32.xlu0 %v271_v7  ;;  %v337_v56 = vpop.permute.xlu1 %336 }
 0x13b   :  { %297 = vperm.xlu0 %765, %v287_v10  }
 0x13f   :  { %433 = vperm.xlu0 %765, %v41_v11  }
 0x1aa   :  { %v164_v18 = vpop.xlane.xlu0 %163 }
 0x1ab   :  { %v165_v19 = vmul.f32 0.00390625, %v164_v18 }
 0x1ad   :  { %v166_v20 = vadd.f32 1e-05, %v165_v19 }
 0x1ae   :  { %v273_v21 = vpop.xlane.xlu0 %272 }
 0x1af   :  { %v274_v22 = vmul.f32 0.00390625, %v273_v21  ;;  %779 = vrcp.f32 %v166_v20 }
 0x1b1   :  { %v275_v23 = vadd.f32 1e-05, %v274_v22 }
 0x1b3   :  { %781 = vrcp.f32 %v275_v23 }
 0x1b6   :  { %v298_v11 = vpop.permute.xlu0 %297 }
 0x1bc   :  { %v780_v24 = vpop.eup %779 }
 0x1bd   :  { %v171_v26 = vmul.f32 %v780_v24, %v165_v19 }
 0x1c0   :  { %v782_v25 = vpop.eup %781 }
 0x1c1   :  { %v280_v27 = vmul.f32 %v782_v25, %v274_v22 }
 0x1c3   :  { %v281_v28 = vadd.f32 %v280_v27, %v171_v26 }
 0x1c5   :  { %v283_v29 = vmul.f32 0.5, %v281_v28 }
 0x1c7   :  { %v284_v30 = vadd.f32 1e-05, %v283_v29 }
 0x1c9   :  { %783 = vrsqrt.f32 %v284_v30 }
 0x1ca   :  { %785 = vrsqrt.f32 %v166_v20 }
 0x1cb   :  { %787 = vrsqrt.f32 %v275_v23 }
 0x1d6   :  { %v784_v32 = vpop.eup %783 }
 0x1d7   :  { %v286_v33 = vmul.f32 %v784_v32, %v282_v31  ;;  %v786_v62 = vpop.eup %785 }
 0x1d8   :  { %v788_v63 = vpop.eup %787  ;;  %v168_v1 = vmul.f32 %v786_v62, %v158_v59  ;;  %v169_v5 = vmul.f32 %v786_v62, %v159_v61 }
 0x1d9   :  { %290 = vperm.xlu1 %768, %v286_v33   ;;  %v277_v6 = vmul.f32 %v788_v63, %v987_v57  ;;  %v278_v7 = vmul.f32 %v788_v63, %v989_v58 }
 0x1dd   :  { %769 = vset.pattern.permute.xlu1 %v802_v4 }
 0x1de   :  { %352 = vperm.xlu1 %769, %v40_v52  }
 0x1e2   :  { %770 = vset.pattern.permute.xlu1 %v803_v34 }
 0x1e3   :  { %368 = vperm.xlu1 %770, %v40_v52  }
 0x1e7   :  { %771 = vset.pattern.permute.xlu1 %v804_v39 }
 0x1e8   :  { %384 = vperm.xlu1 %771, %v40_v52  }
 0x1ec   :  { %772 = vset.pattern.permute.xlu1 %v805_v60 }
 0x1ed   :  { %400 = vperm.xlu1 %772, %v40_v52  }
 0x1f1   :  { %773 = vset.pattern.permute.xlu1 %v806_v53 }
 0x1f2   :  { %416 = vperm.xlu1 %773, %v40_v52  }
 0x1f6   :  { %774 = vset.pattern.permute.xlu1 %v801_v3 }
 0x254   :  { %v291_v10 = vpop.permute.xlu1 %290 }
 0x255   :  { %v293_v18 = vmul.f32 %v291_v10, %v168_v1  ;;  %v294_v19 = vmul.f32 %v291_v10, %v169_v5  ;;  %v456_v52 = vmul.f32 %v291_v10, %v277_v6  ;;  %v457_v21 = vmul.f32 %v291_v10, %v278_v7 }
 0x257   :  { %v300_v3 = vadd.f32 %v298_v11, %v293_v18  ;;  %v301_v20 = vadd.f32 %v298_v11, %v294_v19  ;;  %v458_v22 = vadd.f32 %v456_v52, %v298_v11  ;;  %v459_v23 = vadd.f32 %v457_v21, %v298_v11 }
 0x259   :  { %v1008_v24 = vmax.f32 %v300_v3, 0.0  ;;  %v1010_v25 = vmax.f32 %v301_v20, 0.0  ;;  %v353_v59 = vpop.permute.xlu1 %352  ;;  %v1012_v61 = vmax.f32 %v458_v22, 0.0  ;;  %v1014_v57 = vmax.f32 %v459_v23, 0.0 }
 0x25b   :  { %v312_v58 = vrot.slane %v1008_v24, %v879_v8  ;;  %v316_v26 = vrot.slane %v1010_v25, %v879_v8  ;;  %v326_v27 = vrot.slane %v1008_v24, %v893_v14  ;;  %v330_v28 = vrot.slane %v1010_v25, %v893_v14 }
 0x25c   :  { %v342_v29 = vrot.slane %v1008_v24, %v889_v12  ;;  %v346_v30 = vrot.slane %v1010_v25, %v889_v12  ;;  %v358_v31 = vrot.slane %v1008_v24, %v897_v16  ;;  %v362_v32 = vrot.slane %v1010_v25, %v897_v16 }
 0x25d   :  { %v317_v33 = vmul.f32 %v312_v58, %v307_v54  ;;  %v318_v34 = vmul.f32 %v316_v26, %v307_v54  ;;  %v331_v39 = vmul.f32 %v326_v27, %v321_v55  ;;  %v332_v60 = vmul.f32 %v330_v28, %v321_v55 }
 0x25e   :  { %v347_v53 = vmul.f32 %v342_v29, %v337_v56  ;;  %v348_v62 = vmul.f32 %v346_v30, %v337_v56  ;;  %v363_v63 = vmul.f32 %v358_v31, %v353_v59  ;;  %v364_v1 = vmul.f32 %v362_v32, %v353_v59  ;;  %v369_v5 = vpop.permute.xlu1 %368 }
 0x25f   :  { %v333_v6 = vadd.f32 %v331_v39, %v317_v33  ;;  %v334_v7 = vadd.f32 %v332_v60, %v318_v34  ;;  %v465_v10 = vrot.slane %v1012_v61, %v879_v8  ;;  %v469_v11 = vrot.slane %v1014_v57, %v879_v8 }
 0x260   :  { %v475_v18 = vrot.slane %v1012_v61, %v893_v14  ;;  %v479_v19 = vrot.slane %v1014_v57, %v893_v14  ;;  %v487_v52 = vrot.slane %v1012_v61, %v889_v12  ;;  %v491_v21 = vrot.slane %v1014_v57, %v889_v12 }
 0x261   :  { %v349_v3 = vadd.f32 %v347_v53, %v333_v6  ;;  %v350_v20 = vadd.f32 %v348_v62, %v334_v7  ;;  %v470_v22 = vmul.f32 %v465_v10, %v307_v54  ;;  %v471_v23 = vmul.f32 %v469_v11, %v307_v54 }
 0x262   :  { %v480_v58 = vmul.f32 %v475_v18, %v321_v55  ;;  %v481_v26 = vmul.f32 %v479_v19, %v321_v55  ;;  %v492_v27 = vmul.f32 %v487_v52, %v337_v56  ;;  %v493_v8 = vmul.f32 %v491_v21, %v337_v56 }
 0x263   :  { %v365_v28 = vadd.f32 %v363_v63, %v349_v3  ;;  %v366_v29 = vadd.f32 %v364_v1, %v350_v20  ;;  %v499_v30 = vrot.slane %v1012_v61, %v897_v16  ;;  %v503_v14 = vrot.slane %v1014_v57, %v897_v16  ;;  %v385_v31 = vpop.permute.xlu1 %384 }
 0x264   :  { %v482_v32 = vadd.f32 %v480_v58, %v470_v22  ;;  %v483_v33 = vadd.f32 %v481_v26, %v471_v23  ;;  %v374_v12 = vrot.slane %v1008_v24, %v881_v9  ;;  %v378_v54 = vrot.slane %v1010_v25, %v881_v9 }
 0x265   :  { %v504_v55 = vmul.f32 %v499_v30, %v353_v59  ;;  %v505_v34 = vmul.f32 %v503_v14, %v353_v59  ;;  %v511_v56 = vrot.slane %v1012_v61, %v881_v9  ;;  %v515_v39 = vrot.slane %v1014_v57, %v881_v9 }
 0x266   :  { %v494_v60 = vadd.f32 %v492_v27, %v482_v32  ;;  %v495_v53 = vadd.f32 %v493_v8, %v483_v33  ;;  %v379_v16 = vmul.f32 %v374_v12, %v369_v5  ;;  %v380_v62 = vmul.f32 %v378_v54, %v369_v5 }
 0x267   :  { %v516_v63 = vmul.f32 %v511_v56, %v369_v5  ;;  %v517_v1 = vmul.f32 %v515_v39, %v369_v5  ;;  %v390_v6 = vrot.slane %v1008_v24, %v895_v15  ;;  %v394_v7 = vrot.slane %v1010_v25, %v895_v15 }
 0x268   :  { %v506_v10 = vadd.f32 %v504_v55, %v494_v60  ;;  %v507_v59 = vadd.f32 %v505_v34, %v495_v53  ;;  %v381_v11 = vadd.f32 %v379_v16, %v365_v28  ;;  %v382_v18 = vadd.f32 %v380_v62, %v366_v29  ;;  %v401_v19 = vpop.permute.xlu1 %400 }
 0x269   :  { %v395_v52 = vmul.f32 %v390_v6, %v385_v31  ;;  %v396_v21 = vmul.f32 %v394_v7, %v385_v31  ;;  %v523_v9 = vrot.slane %v1012_v61, %v895_v15  ;;  %v527_v3 = vrot.slane %v1014_v57, %v895_v15  ;;  %v434_v7 = vpop.permute.xlu0 %433 }
 0x26a   :  { %v518_v5 = vadd.f32 %v516_v63, %v506_v10  ;;  %v519_v20 = vadd.f32 %v517_v1, %v507_v59  ;;  %v406_v22 = vrot.slane %v1008_v24, %v891_v13  ;;  %v410_v23 = vrot.slane %v1010_v25, %v891_v13 }
 0x26b   :  { %v397_v58 = vadd.f32 %v395_v52, %v381_v11  ;;  %v398_v26 = vadd.f32 %v396_v21, %v382_v18  ;;  %v528_v27 = vmul.f32 %v523_v9, %v385_v31  ;;  %v529_v8 = vmul.f32 %v527_v3, %v385_v31 }
 0x26c   :  { %v411_v28 = vmul.f32 %v406_v22, %v401_v19  ;;  %v412_v29 = vmul.f32 %v410_v23, %v401_v19  ;;  %v535_v30 = vrot.slane %v1012_v61, %v891_v13  ;;  %v539_v15 = vrot.slane %v1014_v57, %v891_v13 }
 0x26d   :  { %v530_v14 = vadd.f32 %v528_v27, %v518_v5  ;;  %v531_v32 = vadd.f32 %v529_v8, %v519_v20  ;;  %v417_v33 = vpop.permute.xlu1 %416  ;;  %v422_v12 = vrot.slane %v1008_v24, %v899_v17  ;;  %v426_v54 = vrot.slane %v1010_v25, %v899_v17 }
 0x26e   :  { %v540_v55 = vmul.f32 %v535_v30, %v401_v19  ;;  %v541_v34 = vmul.f32 %v539_v15, %v401_v19  ;;  %v547_v31 = vrot.slane %v1012_v61, %v899_v17  ;;  %v551_v56 = vrot.slane %v1014_v57, %v899_v17  ;;  %v582_v30 = vld [vmem:[%s1152_s8] sm:$0xff] }
 0x26f   :  { %v427_v39 = vmul.f32 %v422_v12, %v417_v33  ;;  %v428_v60 = vmul.f32 %v426_v54, %v417_v33  ;;  %v413_v13 = vadd.f32 %v411_v28, %v397_v58  ;;  %v414_v53 = vadd.f32 %v412_v29, %v398_v26  ;;  %v583_v29 = vld [vmem:[%s1151_s9] sm:$0xff] }
 0x270   :  { %v552_v16 = vmul.f32 %v547_v31, %v417_v33  ;;  %v553_v62 = vmul.f32 %v551_v56, %v417_v33  ;;  %v542_v63 = vadd.f32 %v540_v55, %v530_v14  ;;  %v543_v1 = vadd.f32 %v541_v34, %v531_v32 }
 0x271   :  { %v429_v24 = vadd.f32 %v427_v39, %v413_v13  ;;  %v430_v6 = vadd.f32 %v428_v60, %v414_v53  ;;  %v577_v39 = vld [vmem:[%s1153_s7] sm:$0xff] }
 0x272   :  { %v554_v25 = vadd.f32 %v552_v16, %v542_v63  ;;  %v555_v10 = vadd.f32 %v553_v62, %v543_v1  ;;  %v584_v53 = vld [vmem:[%s1154_s10] sm:$0xff] }
 0x273   :  { %v436_v59 = vadd.f32 %v434_v7, %v429_v24  ;;  %v437_v11 = vadd.f32 %v434_v7, %v430_v6 }
 0x274   :  { %v556_v18 = vadd.f32 %v554_v25, %v434_v7  ;;  %v557_v61 = vadd.f32 %v555_v10, %v434_v7 }
 0x275   :  { %v438_v19 = vadd.f32 %v437_v11, %v436_v59 }
 0x276   :  { %v558_v52 = vadd.f32 %v557_v61, %v556_v18 }
 0x277   :  { %439 = vadd.xlane.f32.xlu1 %v438_v19 }
 0x278   :  { %559 = vadd.xlane.f32.xlu0 %v558_v52 }
 0x300   :  { %v440_v17 = vpop.xlane.xlu1 %439 }
 0x301   :  { %v441_v57 = vmul.f32 0.00390625, %v440_v17  ;;  %v560_v21 = vpop.xlane.xlu0 %559 }
 0x302   :  { %v561_v9 = vmul.f32 0.00390625, %v560_v21 }
 0x303   :  { %v1080_v3 = vsub.f32 %v436_v59, %v441_v57  ;;  %v1082_v5 = vsub.f32 %v437_v11, %v441_v57 }
 0x304   :  { %v1084_v20 = vsub.f32 %v556_v18, %v561_v9  ;;  %v1086_v22 = vsub.f32 %v557_v61, %v561_v9 }
 0x305   :  { %v444_v23 = vmul.f32 %v1080_v3, %v1080_v3  ;;  %v445_v58 = vmul.f32 %v1082_v5, %v1082_v5 }
 0x306   :  { %v564_v26 = vmul.f32 %v1084_v20, %v1084_v20  ;;  %v565_v27 = vmul.f32 %v1086_v22, %v1086_v22 }
 0x307   :  { %v446_v8 = vadd.f32 %v445_v58, %v444_v23 }
 0x308   :  { %v566_v28 = vadd.f32 %v565_v27, %v564_v26 }
 0x309   :  { %447 = vadd.xlane.f32.xlu0 %v446_v8 }
 0x30a   :  { %567 = vadd.xlane.f32.xlu1 %v566_v28 }
 0x31b   :  { %593 = vperm.xlu1 %774, %v583_v29  }
 0x31f   :  { %587 = vperm.xlu0 %765, %v583_v29   ;;  %775 = vset.pattern.permute.xlu1 %v800_v2 }
 0x320   :  { %601 = vperm.xlu1 %775, %v583_v29  }
 0x323   :  { %776 = vset.pattern.permute.xlu0 %v802_v4 }
 0x324   :  { %609 = vperm.xlu0 %776, %v583_v29   ;;  %777 = vset.pattern.permute.xlu1 %v799_v0 }
 0x328   :  { %778 = vset.pattern.permute.xlu0 %v799_v0 }
 0x329   :  { %632 = vperm.xlu0 %778, %v582_v30  }
 0x392   :  { %v448_v15 = vpop.xlane.xlu0 %447 }
 0x393   :  { %v568_v14 = vpop.xlane.xlu1 %567  ;;  %v449_v32 = vmul.f32 0.00390625, %v448_v15 }
 0x394   :  { %v569_v33 = vmul.f32 0.00390625, %v568_v14 }
 0x395   :  { %v450_v54 = vadd.f32 1e-05, %v449_v32 }
 0x396   :  { %v570_v12 = vadd.f32 1e-05, %v569_v33 }
 0x397   :  { %v594_v16 = vpop.permute.xlu1 %593 }
 0x398   :  { %789 = vrcp.f32 %v570_v12  ;;  %v596_v63 = vmul.f32 %v594_v16, %v942_v44  ;;  %v597_v1 = vmul.f32 %v594_v16, %v945_v45  ;;  %v683_v24 = vmul.f32 %v594_v16, %v948_v46 }
 0x399   :  { %791 = vrcp.f32 %v450_v54  ;;  %v684_v6 = vmul.f32 %v594_v16, %v951_v47 }
 0x39a   :  { %v588_v62 = vpop.permute.xlu0 %587 }
 0x39b   :  { %v590_v7 = vmul.f32 %v588_v62, %v918_v35  ;;  %v591_v25 = vmul.f32 %v588_v62, %v921_v36  ;;  %v663_v10 = vmul.f32 %v588_v62, %v924_v37  ;;  %v664_v59 = vmul.f32 %v588_v62, %v927_v38  ;;  %v602_v11 = vpop.permute.xlu1 %601 }
 0x39c   :  { %v604_v18 = vmul.f32 %v602_v11, %v930_v40  ;;  %v605_v61 = vmul.f32 %v602_v11, %v933_v41  ;;  %v705_v44 = vmul.f32 %v602_v11, %v936_v42  ;;  %v706_v45 = vmul.f32 %v602_v11, %v939_v43 }
 0x39d   :  { %v598_v46 = vadd.f32 %v596_v63, %v590_v7  ;;  %v599_v19 = vadd.f32 %v597_v1, %v591_v25  ;;  %v685_v47 = vadd.f32 %v683_v24, %v663_v10  ;;  %v686_v52 = vadd.f32 %v684_v6, %v664_v59 }
 0x39f   :  { %v610_v17 = vpop.permute.xlu0 %609  ;;  %v606_v57 = vadd.f32 %v604_v18, %v598_v46  ;;  %v607_v37 = vadd.f32 %v605_v61, %v599_v19  ;;  %v707_v21 = vadd.f32 %v705_v44, %v685_v47  ;;  %v708_v38 = vadd.f32 %v706_v45, %v686_v52 }
 0x3a0   :  { %v612_v9 = vmul.f32 %v610_v17, %v954_v48  ;;  %v613_v40 = vmul.f32 %v610_v17, %v957_v49  ;;  %v727_v41 = vmul.f32 %v610_v17, %v960_v50  ;;  %v728_v42 = vmul.f32 %v610_v17, %v963_v51 }
 0x3a2   :  { %v614_v15 = vadd.f32 %v612_v9, %v606_v57  ;;  %v615_v49 = vadd.f32 %v613_v40, %v607_v37  ;;  %v729_v14 = vadd.f32 %v727_v41, %v707_v21  ;;  %v730_v50 = vadd.f32 %v728_v42, %v708_v38 }
 0x3a4   :  { %v633_v48 = vpop.permute.xlu0 %632 }
 0x3a5   :  { %v790_v2 = vpop.eup %789 }
 0x3a6   :  { %v792_v4 = vpop.eup %791  ;;  %v575_v55 = vmul.f32 %v790_v2, %v569_v33 }
 0x3a7   :  { %v455_v34 = vmul.f32 %v792_v4, %v449_v32 }
 0x3a9   :  { %v576_v31 = vadd.f32 %v575_v55, %v455_v34 }
 0x3ab   :  { %v578_v56 = vmul.f32 0.5, %v576_v31 }
 0x3ad   :  { %v579_v0 = vadd.f32 1e-05, %v578_v56 }
 0x3af   :  { %793 = vrsqrt.f32 %v579_v0 }
 0x3b0   :  { %795 = vrsqrt.f32 %v450_v54 }
 0x3b1   :  { %797 = vrsqrt.f32 %v570_v12 }
 0x3bc   :  { %v794_v60 = vpop.eup %793 }
 0x3bd   :  { %v581_v13 = vmul.f32 %v794_v60, %v577_v39  ;;  %v796_v35 = vpop.eup %795 }
 0x3be   :  { %v798_v36 = vpop.eup %797  ;;  %v452_v43 = vmul.f32 %v796_v35, %v1080_v3  ;;  %v453_v23 = vmul.f32 %v796_v35, %v1082_v5 }
 0x3bf   :  { %625 = vperm.xlu1 %777, %v581_v13   ;;  %v572_v58 = vmul.f32 %v798_v36, %v1084_v20  ;;  %v573_v26 = vmul.f32 %v798_v36, %v1086_v22 }
 0x3c3   :  { %618 = vperm.xlu1 %777, %v584_v53  }
 0x43a   :  { %v626_v27 = vpop.permute.xlu1 %625 }
 0x43b   :  { %v628_v8 = vmul.f32 %v626_v27, %v452_v43  ;;  %v629_v28 = vmul.f32 %v626_v27, %v453_v23  ;;  %v733_v29 = vmul.f32 %v626_v27, %v572_v58  ;;  %v734_v30 = vmul.f32 %v626_v27, %v573_v26 }
 0x43d   :  { %v635_v32 = vadd.f32 %v633_v48, %v628_v8  ;;  %v636_v51 = vadd.f32 %v633_v48, %v629_v28  ;;  %v735_v33 = vadd.f32 %v733_v29, %v633_v48  ;;  %v736_v3 = vadd.f32 %v734_v30, %v633_v48 }
 0x43e   :  { %v619_v12 = vpop.permute.xlu1 %618 }
 0x43f   :  { %v621_v5 = vadd.f32 %v619_v12, %v614_v15  ;;  %v622_v54 = vadd.f32 %v619_v12, %v615_v49  ;;  %v731_v20 = vadd.f32 %v729_v14, %v619_v12  ;;  %v732_v2 = vadd.f32 %v730_v50, %v619_v12 }
 0x441   :  { %v637_v22 = vadd.f32 %v635_v32, %v621_v5  ;;  %v638_v4 = vadd.f32 %v636_v51, %v622_v54  ;;  %v737_v55 = vadd.f32 %v735_v33, %v731_v20  ;;  %v738_v34 = vadd.f32 %v736_v3, %v732_v2 }
 0x443   :  { %v639_v31 = vmax.f32 %v637_v22, 0.0  ;;  %v640_v56 = vmax.f32 %v638_v4, 0.0  ;;  %v739_v0 = vmax.f32 %v737_v55, 0.0  ;;  %v740_v39 = vmax.f32 %v738_v34, 0.0 }
 0x445   :  { %641 = vst [vmem:[%s1155_s11] sm:$0xff] %v639_v31  ;;  %642 = vst [vmem:[%s1155_s11 + $0x8] sm:$0xff] %v640_v56 }
 0x446   :  { %750 = vst [vmem:[%s1155_s11 + $0x10] sm:$0xff] %v739_v0  ;;  %751 = vst [vmem:[%s1155_s11 + $0x18] sm:$0xff] %v740_v39 }

</bundles_post_ra>
